<compile_context>
chip_gen: v7x
topology: tpu7x:2x2x1
jax: 0.10.0
libtpu: 0.0.40
codegen_flags: <defaults>
</compile_context>

<pallas_src>
import jax
import jax.numpy as jnp
from jax.experimental import pallas as pl
from jax.experimental.pallas import tpu as pltpu


# ----------------------------- Pallas kernel -------------------------------
def _score_kernel(x_ref, w1_ref, b1_ref, w2_ref, b2_ref, w3_ref, b3_ref, o_ref):
    """Fused MLP for one batch tile. Everything (x tile, all weights, biases,
    intermediates) lives in VMEM / vregs; output is written once."""
    x = x_ref[...]                                                     # (tb, D_in)

    h1 = jnp.dot(x, w1_ref[...], preferred_element_type=jnp.float32) + b1_ref[...]
    h1 = jnp.maximum(h1, 0.0)                                          # ReLU
    # TODO(synk): nn.Dropout(drop_prob) is identity in eval / p=0.0; train-mode
    # stochastic dropout would use pltpu.prng_seed + pltpu.stateful_bernoulli.

    h2 = jnp.dot(h1, w2_ref[...], preferred_element_type=jnp.float32) + b2_ref[...]
    h2 = jnp.maximum(h2, 0.0)                                          # ReLU

    out = jnp.dot(h2, w3_ref[...], preferred_element_type=jnp.float32) + b3_ref[...]
    o_ref[...] = out.astype(o_ref.dtype)


def score_pallas(x, w1, b1, w2, b2, w3, b3, *, block_b=None):
    """x: (B, D_in) f32; w1: (D_in, H); w2: (H, H); w3: (H, D_out);
    biases shaped (1, H)/(1, H)/(1, D_out). Returns (B, D_out) f32."""
    B, D_in = x.shape
    H = w1.shape[1]
    D_out = w3.shape[1]
    if block_b is None:
        block_b = B if B <= 256 else 256          # small batches: 1 grid point
    grid_b = pl.cdiv(B, block_b)

    return pl.pallas_call(
        _score_kernel,
        out_shape=jax.ShapeDtypeStruct((B, D_out), jnp.float32),
        grid_spec=pltpu.PrefetchScalarGridSpec(
            num_scalar_prefetch=0,
            grid=(grid_b,),
            in_specs=[
                pl.BlockSpec((block_b, D_in), lambda i: (i, 0)),   # x tile
                pl.BlockSpec((D_in, H), lambda i: (0, 0)),         # W1 (resident)
                pl.BlockSpec((1, H), lambda i: (0, 0)),            # b1
                pl.BlockSpec((H, H), lambda i: (0, 0)),            # W2 (resident)
                pl.BlockSpec((1, H), lambda i: (0, 0)),            # b2
                pl.BlockSpec((H, D_out), lambda i: (0, 0)),        # W3 (resident)
                pl.BlockSpec((1, D_out), lambda i: (0, 0)),        # b3
            ],
            out_specs=pl.BlockSpec((block_b, D_out), lambda i: (i, 0)),
        ),
        compiler_params=pltpu.CompilerParams(
            dimension_semantics=("parallel",)),    # batch tiles are independent
    )(x, w1, b1, w2, b2, w3, b3)


# --------------------------- pure-JAX reference -----------------------------
def score_ref(x, w1, b1, w2, b2, w3, b3):
    h1 = jnp.maximum(x @ w1 + b1, 0.0)
    h2 = jnp.maximum(h1 @ w2 + b2, 0.0)
    return h2 @ w3 + b3


# --------------------------------- driver -----------------------------------
if __name__ == "__main__":
    key = jax.random.PRNGKey(0)

    # Score(input_dim=64, hidden_dim=32, out_dim=2, drop_prob=0.0)
    B, D_IN, H, D_OUT = 8, 64, 32, 2     # 8 sentence representations

    k_x, k_w1, k_b1, k_w2, k_b2, k_w3, k_b3 = jax.random.split(key, 7)

    # Encoder outputs ("higher_output").
    x = jax.random.normal(k_x, (B, D_IN), dtype=jnp.float32)

    # PyTorch-style Linear init: uniform(-1/sqrt(fan_in), 1/sqrt(fan_in)),
    # weight stored (out, in) then transposed for the kernel.
    def linear_params(kw, kb, fan_in, fan_out):
        s = 1.0 / jnp.sqrt(jnp.float32(fan_in))
        w = jax.random.uniform(kw, (fan_out, fan_in), jnp.float32, -s, s)
        b = jax.random.uniform(kb, (fan_out,), jnp.float32, -s, s)
        return w.T, b.reshape(1, fan_out)          # (in, out), (1, out)

    w1, b1 = linear_params(k_w1, k_b1, D_IN, H)
    w2, b2 = linear_params(k_w2, k_b2, H, H)
    w3, b3 = linear_params(k_w3, k_b3, H, D_OUT)

    out = score_pallas(x, w1, b1, w2, b2, w3, b3)
    out = jax.block_until_ready(out)

    ref = score_ref(x, w1, b1, w2, b2, w3, b3)
    assert out.shape == (B, D_OUT)
    assert jnp.allclose(out, ref, atol=1e-5, rtol=1e-5), "mismatch vs reference"

    print("KERNEL_OK")
</pallas_src>

<mosaic_0001>
module attributes {stable_mosaic.version = 11 : i64} {
  func.func @_score_kernel(%arg0: i32, %arg1: memref<8x64xf32, #tpu.memory_space<vmem>>, %arg2: memref<64x32xf32, #tpu.memory_space<vmem>>, %arg3: memref<1x32xf32, #tpu.memory_space<vmem>>, %arg4: memref<32x32xf32, #tpu.memory_space<vmem>>, %arg5: memref<1x32xf32, #tpu.memory_space<vmem>>, %arg6: memref<32x2xf32, #tpu.memory_space<vmem>>, %arg7: memref<1x2xf32, #tpu.memory_space<vmem>>, %arg8: memref<8x2xf32, #tpu.memory_space<vmem>>) attributes {dimension_semantics = [#tpu.dimension_semantics<parallel>], iteration_bounds = array<i64: 1>, scalar_prefetch = 0 : i64, scratch_operands = 0 : i64, tpu.core_type = #tpu.core_type<tc>, window_params = [{transform_indices = @transform_0, window_bounds = array<i64: 8, 64>}, {pipeline_mode = #tpu.pipeline_mode<synchronous>, transform_indices = @transform_1, window_bounds = array<i64: 64, 32>}, {pipeline_mode = #tpu.pipeline_mode<synchronous>, transform_indices = @transform_2, window_bounds = array<i64: 1, 32>}, {pipeline_mode = #tpu.pipeline_mode<synchronous>, transform_indices = @transform_3, window_bounds = array<i64: 32, 32>}, {pipeline_mode = #tpu.pipeline_mode<synchronous>, transform_indices = @transform_4, window_bounds = array<i64: 1, 32>}, {pipeline_mode = #tpu.pipeline_mode<synchronous>, transform_indices = @transform_5, window_bounds = array<i64: 32, 2>}, {pipeline_mode = #tpu.pipeline_mode<synchronous>, transform_indices = @transform_6, window_bounds = array<i64: 1, 2>}, {transform_indices = @transform_7, window_bounds = array<i64: 8, 2>}]} {
    %c0 = arith.constant 0 : index
    %c0_0 = arith.constant 0 : index
    %0 = vector.load %arg1[%c0, %c0_0] : memref<8x64xf32, #tpu.memory_space<vmem>>, vector<8x64xf32>
    %c0_1 = arith.constant 0 : index
    %c0_2 = arith.constant 0 : index
    %1 = vector.load %arg2[%c0_1, %c0_2] : memref<64x32xf32, #tpu.memory_space<vmem>>, vector<64x32xf32>
    %cst = arith.constant dense<0.000000e+00> : vector<8x32xf32>
    %2 = tpu.matmul %0, %1, %cst {dimension_numbers = #tpu.dot_dimension_numbers<[1], [0], [0], [1], [0, 0, 1, 1], [], []>} : vector<8x64xf32>, vector<64x32xf32>, vector<8x32xf32> -> vector<8x32xf32>
    %c0_3 = arith.constant 0 : index
    %c0_4 = arith.constant 0 : index
    %3 = vector.load %arg3[%c0_3, %c0_4] : memref<1x32xf32, #tpu.memory_space<vmem>>, vector<1x32xf32>
    %4 = vector.broadcast %3 : vector<1x32xf32> to vector<8x32xf32>
    %5 = arith.addf %2, %4 : vector<8x32xf32>
    %cst_5 = arith.constant 0.000000e+00 : f32
    %6 = vector.broadcast %cst_5 : f32 to vector<8x32xf32>
    %7 = arith.maximumf %5, %6 : vector<8x32xf32>
    %c0_6 = arith.constant 0 : index
    %c0_7 = arith.constant 0 : index
    %8 = vector.load %arg4[%c0_6, %c0_7] : memref<32x32xf32, #tpu.memory_space<vmem>>, vector<32x32xf32>
    %cst_8 = arith.constant dense<0.000000e+00> : vector<8x32xf32>
    %9 = tpu.matmul %7, %8, %cst_8 {dimension_numbers = #tpu.dot_dimension_numbers<[1], [0], [0], [1], [0, 0, 1, 1], [], []>} : vector<8x32xf32>, vector<32x32xf32>, vector<8x32xf32> -> vector<8x32xf32>
    %c0_9 = arith.constant 0 : index
    %c0_10 = arith.constant 0 : index
    %10 = vector.load %arg5[%c0_9, %c0_10] : memref<1x32xf32, #tpu.memory_space<vmem>>, vector<1x32xf32>
    %11 = vector.broadcast %10 : vector<1x32xf32> to vector<8x32xf32>
    %12 = arith.addf %9, %11 : vector<8x32xf32>
    %cst_11 = arith.constant 0.000000e+00 : f32
    %13 = vector.broadcast %cst_11 : f32 to vector<8x32xf32>
    %14 = arith.maximumf %12, %13 : vector<8x32xf32>
    %c0_12 = arith.constant 0 : index
    %c0_13 = arith.constant 0 : index
    %15 = vector.load %arg6[%c0_12, %c0_13] : memref<32x2xf32, #tpu.memory_space<vmem>>, vector<32x2xf32>
    %cst_14 = arith.constant dense<0.000000e+00> : vector<8x2xf32>
    %16 = tpu.matmul %14, %15, %cst_14 {dimension_numbers = #tpu.dot_dimension_numbers<[1], [0], [0], [1], [0, 0, 1, 1], [], []>} : vector<8x32xf32>, vector<32x2xf32>, vector<8x2xf32> -> vector<8x2xf32>
    %c0_15 = arith.constant 0 : index
    %c0_16 = arith.constant 0 : index
    %17 = vector.load %arg7[%c0_15, %c0_16] : memref<1x2xf32, #tpu.memory_space<vmem>>, vector<1x2xf32>
    %18 = vector.broadcast %17 : vector<1x2xf32> to vector<8x2xf32>
    %19 = arith.addf %16, %18 : vector<8x2xf32>
    %c0_17 = arith.constant 0 : index
    %c0_18 = arith.constant 0 : index
    %20 = vector.load %arg8[%c0_17, %c0_18] : memref<8x2xf32, #tpu.memory_space<vmem>>, vector<8x2xf32>
    tpu.vector_store %arg8[%c0_17, %c0_18], %19 {strides = array<i32>} : memref<8x2xf32, #tpu.memory_space<vmem>>, vector<8x2xf32>,
    return
  }
  func.func @transform_0(%arg0: i32) -> (i32, i32) {
    %c0_i32 = arith.constant 0 : i32
    %c0_i32_0 = arith.constant 0 : i32
    return %arg0, %c0_i32 : i32, i32
  }
  func.func @transform_1(%arg0: i32) -> (i32, i32) {
    %c0_i32 = arith.constant 0 : i32
    %c0_i32_0 = arith.constant 0 : i32
    %c0_i32_1 = arith.constant 0 : i32
    return %c0_i32, %c0_i32_0 : i32, i32
  }
  func.func @transform_2(%arg0: i32) -> (i32, i32) {
    %c0_i32 = arith.constant 0 : i32
    %c0_i32_0 = arith.constant 0 : i32
    %c0_i32_1 = arith.constant 0 : i32
    return %c0_i32, %c0_i32_0 : i32, i32
  }
  func.func @transform_3(%arg0: i32) -> (i32, i32) {
    %c0_i32 = arith.constant 0 : i32
    %c0_i32_0 = arith.constant 0 : i32
    %c0_i32_1 = arith.constant 0 : i32
    return %c0_i32, %c0_i32_0 : i32, i32
  }
  func.func @transform_4(%arg0: i32) -> (i32, i32) {
    %c0_i32 = arith.constant 0 : i32
    %c0_i32_0 = arith.constant 0 : i32
    %c0_i32_1 = arith.constant 0 : i32
    return %c0_i32, %c0_i32_0 : i32, i32
  }
  func.func @transform_5(%arg0: i32) -> (i32, i32) {
    %c0_i32 = arith.constant 0 : i32
    %c0_i32_0 = arith.constant 0 : i32
    %c0_i32_1 = arith.constant 0 : i32
    return %c0_i32, %c0_i32_0 : i32, i32
  }
  func.func @transform_6(%arg0: i32) -> (i32, i32) {
    %c0_i32 = arith.constant 0 : i32
    %c0_i32_0 = arith.constant 0 : i32
    %c0_i32_1 = arith.constant 0 : i32
    return %c0_i32, %c0_i32_0 : i32, i32
  }
  func.func @transform_7(%arg0: i32) -> (i32, i32) {
    %c0_i32 = arith.constant 0 : i32
    %c0_i32_0 = arith.constant 0 : i32
    return %arg0, %c0_i32 : i32, i32
  }
}

</mosaic_0001>

<bundles_post_ra>
// kernel: tpu_custom_call.1
= control target key start
LH: loop header
LB: loop body
LE: loop exit
PB: predicated region body
PF: predicated region fallthrough
CT: control target
= control target key end

     0   :  { %v386_v0 = vmov 0.0|0.0   ;;  %vm387_vm0 = vmmov 0   ;;  %v388_v4 = vmov 0.0   ;;  %vm42_vm1 = vcmask 523264   ;;  %s497_s1 = inlined_call_operand.vmem [shape: f32[64,32], index: 1, kind: input, shape index: {}]   ;;  %s498_s3 = inlined_call_operand.vmem [shape: f32[32,32], index: 3, kind: input, shape index: {}]   ;;  %s499_s0 = inlined_call_operand.vmem [shape: f32[8,64], index: 0, kind: input, shape index: {}]   ;;  %s500_s2 = inlined_call_operand.vmem [shape: f32[1,32], index: 2, kind: input, shape index: {}]   ;;  %s501_s5 = inlined_call_operand.vmem [shape: f32[32,2], index: 5, kind: input, shape index: {}]   ;;  %s502_s4 = inlined_call_operand.vmem [shape: f32[1,32], index: 4, kind: input, shape index: {}]   ;;  %s503_s6 = inlined_call_operand.vmem [shape: f32[1,2], index: 6, kind: input, shape index: {}]   ;;  %s504_s7 = inlined_call_operand.vmem [shape: f32[8,2], index: 7, kind: output, shape index: {}]  }
   0x1   :  { %359 = vmatprep.subr.bf16.mxu0 %v386_v0  ;;  %v27_v1 = vld [vmem:[%s497_s1] sm:$0xff]  ;;  %v28_v2 = vld [vmem:[%s497_s1 + $0x8] sm:$0xff]  ;;  %v29_v3 = vld [vmem:[%s497_s1 + $0x10] sm:$0xff]  ;;  %334 = vmatprep.mubr.msk.f32.mxu0 %vm387_vm0, %v388_v4  ;;  %vm128_vm2 = vcmask 261120   ;;  %vm287_vm3 = vcmask 15360  }
   0x2   :  { %v360_v5 = vpack.c.bf16 %v28_v2, %v27_v1  ;;  %v30_v6 = vld [vmem:[%s497_s1 + $0x18] sm:$0xff]  ;;  %371 = vmatprep.subr.bf16.mxu1 %v386_v0  ;;  %345 = vmatprep.mubr.msk.f32.mxu1 %vm387_vm0, %v388_v4  ;;  %v117_v8 = vld [vmem:[%s498_s3] sm:$0xff]  ;;  %v118_v9 = vld [vmem:[%s498_s3 + $0x8] sm:$0xff] }
   0x3   :  { %v363_v7 = vpack.c.bf16 %v30_v6, %v29_v3  ;;  %v31_v10 = vld [vmem:[%s497_s1 + $0x20] sm:$0xff]  ;;  %v32_v11 = vld [vmem:[%s497_s1 + $0x28] sm:$0xff]  ;;  %v372_v12 = vpack.c.bf16 %v118_v9, %v117_v8  ;;  %v33_v14 = vld [vmem:[%s497_s1 + $0x30] sm:$0xff] }
   0x4   :  { %361 = vmatpush3.bf16.msra.mxu0 %v360_v5  ;;  %v366_v13 = vpack.c.bf16 %v32_v11, %v31_v10  ;;  %v34_v15 = vld [vmem:[%s497_s1 + $0x38] sm:$0xff]  ;;  %v26_v17 = vld [vmem:[%s499_s0] sm:$0xff]  ;;  %v119_v18 = vld [vmem:[%s498_s3 + $0x10] sm:$0xff] }
   0x5   :  { %362 = vmatprep.subr.bf16.mxu0 %v386_v0  ;;  %373 = vmatpush3.bf16.msra.mxu1 %v372_v12  ;;  %v369_v16 = vpack.c.bf16 %v34_v15, %v33_v14  ;;  %v120_v19 = vld [vmem:[%s498_s3 + $0x18] sm:$0xff]  ;;  %v293_v21 = vld [vmem:[%s500_s2] ss:$0 sm:$0xff]  ;;  %v204_v23 = vld [vmem:[%s501_s5 + $0x8] sm:$0xff] }
   0x6   :  { %374 = vmatprep.subr.bf16.mxu1 %v386_v0  ;;  %v375_v20 = vpack.c.bf16 %v120_v19, %v119_v18  ;;  %v203_v22 = vld [vmem:[%s501_s5] sm:$0xff]  ;;  %v205_v29 = vld [vmem:[%s501_s5 + $0x10] sm:$0xff]  ;;  %v206_v30 = vld [vmem:[%s501_s5 + $0x18] sm:$0xff] }
   0x7   :  { %v378_v27 = vpack.c.bf16 %v204_v23, %v203_v22  ;;  %v381_v31 = vpack.c.bf16 %v206_v30, %v205_v29  ;;  %v295_v32 = vld [vmem:[%s502_s4] ss:$0 sm:$0xff] }
   0x8   :  { %364 = vmatpush3.bf16.msra.mxu0 %v363_v7  ;;  %v297_v37 = vld [vmem:[%s503_s6] ss:$0 sm:$0xff] }
   0x9   :  { %365 = vmatprep.subr.bf16.mxu0 %v386_v0  ;;  %376 = vmatpush3.bf16.msra.mxu1 %v375_v20 }
   0xa   :  { %377 = vmatprep.subr.bf16.mxu1 %v386_v0 }
   0xc   :  { %367 = vmatpush3.bf16.msra.mxu0 %v366_v13 }
   0xd   :  { %368 = vmatprep.subr.bf16.mxu0 %v386_v0 }
  0x10   :  { %370 = vmatpush3.bf16.msra.mxu0 %v369_v16 }
  0x13   :  { %335 = vmatmul.mubr.msk.f32.vlgmr.msra.gmra.mrb[0].mxu0 %vm42_vm1, %v26_v17 }
  0xe6   :  { %v112_v24 = vpop.f32.mrb[0].mxu0 }
  0xe7   :  { %v113_v25 = vadd.f32 %v293_v21, %v112_v24  ;;  %v336_v26 = vpop.f32.mrb[1].mxu0 }
  0xe9   :  { %v116_v28 = vmax.f32 %v113_v25, 0.0 }
  0xeb   :  { %346 = vmatmul.mubr.msk.f32.vlgmr.msra.gmra.mrb[0].mxu1 %vm128_vm2, %v116_v28 }
  0xec   :  { %379 = vmatpush3.bf16.msra.mxu1 %v378_v27  ;;  %356 = vmatprep.mubr.msk.f32.mxu1 %vm387_vm0, %v388_v4 }
  0xed   :  { %380 = vmatprep.subr.bf16.mxu1 %v386_v0 }
  0xf0   :  { %382 = vmatpush3.bf16.msra.mxu1 %v381_v31 }
 0x1be   :  { %v198_v33 = vpop.f32.mrb[0].mxu1 }
 0x1bf   :  { %v199_v34 = vadd.f32 %v295_v32, %v198_v33  ;;  %v347_v35 = vpop.f32.mrb[1].mxu1 }
 0x1c1   :  { %v202_v36 = vmax.f32 %v199_v34, 0.0 }
 0x1c3   :  { %357 = vmatmul.mubr.msk.f32.vlgmr.msra.gmra.mrb[2].mxu1 %vm128_vm2, %v202_v36 }
 0x296   :  { %v283_v38 = vpop.f32.mrb[2].mxu1 }
 0x297   :  { %v284_v39 = vadd.f32 %v297_v37, %v283_v38  ;;  %v358_v40 = vpop.f32.mrb[3].mxu1 }
 0x299   :  { %288 = vst.msk [vmem:[%s504_s7] sm:$0xff] %vm287_vm3, %v284_v39 }

</bundles_post_ra>
